<compile_context>
chip_gen: v7x
topology: tpu7x:2x2x1
jax: 0.10.0
libtpu: 0.0.40
codegen_flags: <defaults>
</compile_context>

<pallas_src>
import jax
import jax.numpy as jnp
from jax import lax
from jax.experimental import pallas as pl
from jax.experimental.pallas import tpu as pltpu

LANE = 128
CONST_EPS = 1e-05


def _round_up(x, m):
    return (x + m - 1) // m * m


def role_selector_kernel(n_ref, b2_ref,            # SMEM scalars: (1,) i32, (1,) f32
                         role_ref, u_ref,          # (TILE_N, D) f32, (1, TILE_N) f32
                         w1r_ref, b1_ref, w2_ref,  # (H, D), (H, 1), (H, 1) f32
                         sel_ref, logp_ref,        # (1, TILE_N) i32, (1, 1) f32
                         sel_sum, none_sum, cnt):  # VMEM (1, 1) f32 accumulators
    i = pl.program_id(0)
    tile_n = u_ref.shape[1]

    @pl.when(i == 0)
    def _():
        sel_sum[...] = jnp.zeros_like(sel_sum)
        none_sum[...] = jnp.zeros_like(none_sum)
        cnt[...] = jnp.zeros_like(cnt)

    # First Linear (role half only): contract in_dim of (H, D) with in_dim of
    # (TILE_N, D) -> (H, TILE_N).  Roles land on the lane axis; the query
    # contribution is already folded into b1_eff.
    h = lax.dot_general(w1r_ref[...], role_ref[...],
                        dimension_numbers=(((1,), (1,)), ((), ())),
                        preferred_element_type=jnp.float32)
    h = jnp.maximum(h + b1_ref[...], 0.0)                       # (H, TILE_N)

    # Second Linear has output width 1 -> keep it off the MXU: VPU multiply +
    # sublane reduce yields a lane-dense (1, TILE_N) logits row.
    logits = jnp.sum(h * w2_ref[...], axis=0, keepdims=True) + b2_ref[0]

    # Mask for padded roles in the last tile.
    col = i * tile_n + lax.broadcasted_iota(jnp.int32, (1, tile_n), 1)
    valid = col < n_ref[0]

    # Bernoulli sample: u < sigmoid(logits).
    scores = jax.nn.sigmoid(logits)
    sel = jnp.logical_and(u_ref[...] < scores, valid)           # (1, TILE_N) bool

    # Exactly the module's formulation (CONST_EPS inside the log).  EUP ops
    # (sigmoid / log) ride the dedicated EUP slot -> effectively free here.
    log_p = jnp.log(scores + CONST_EPS)
    log_1mp = jnp.log(1.0 - scores + CONST_EPS)

    sel_sum[...] += jnp.sum(jnp.where(sel, log_p, 0.0), axis=1, keepdims=True)
    none_sum[...] += jnp.sum(jnp.where(valid, log_1mp, 0.0), axis=1, keepdims=True)
    cnt[...] += jnp.sum(sel.astype(jnp.float32), axis=1, keepdims=True)

    sel_ref[...] = sel.astype(jnp.int32)

    @pl.when(i == pl.num_programs(0) - 1)
    def _():
        logp_ref[...] = jnp.where(cnt[...] > 0.0, sel_sum[...], none_sum[...])


def role_selector_forward(query_embedding, role_embedding, params, key):
    """params use the PyTorch nn.Linear layout:
         w1: (hidden, 2*in_dim)  b1: (hidden,)  w2: (1, hidden)  b2: (1,)
    Returns (selected_role_index: bool (N,), log_probs: f32 scalar)."""
    n, in_dim = role_embedding.shape
    hidden = params["b1"].shape[0]

    tile_n = min(512, _round_up(n, LANE))
    n_pad = _round_up(n, tile_n)
    grid = (n_pad // tile_n,)

    role_p = jnp.pad(role_embedding.astype(jnp.float32), ((0, n_pad - n), (0, 0)))
    # TODO(synk): for large N feed role_p / w1r as bfloat16 (f32 accumulation
    # via preferred_element_type) to halve the dominant HBM read traffic.

    w1 = params["w1"].astype(jnp.float32)
    w1r = w1[:, :in_dim]                                    # (H, D) role half
    w1q = w1[:, in_dim:]                                    # (H, D) query half
    # Fold the query half of the first Linear into its bias.
    b1_eff = (w1q @ query_embedding.astype(jnp.float32)
              + params["b1"].astype(jnp.float32)).reshape(hidden, 1)
    w2_col = params["w2"].astype(jnp.float32).reshape(hidden, 1)
    b2 = params["b2"].astype(jnp.float32).reshape(1)
    n_arr = jnp.array([n], dtype=jnp.int32)

    # Uniform draws for the Bernoulli sample (padded lanes masked in-kernel).
    u = jax.random.uniform(key, (1, n_pad), dtype=jnp.float32)

    smem = pl.BlockSpec(memory_space=pltpu.MemorySpace.SMEM)

    sel_i32, logp = pl.pallas_call(
        role_selector_kernel,
        out_shape=(jax.ShapeDtypeStruct((1, n_pad), jnp.int32),
                   jax.ShapeDtypeStruct((1, 1), jnp.float32)),
        grid=grid,
        in_specs=[smem, smem,
                  pl.BlockSpec((tile_n, in_dim), lambda i: (i, 0)),
                  pl.BlockSpec((1, tile_n), lambda i: (0, i)),
                  pl.BlockSpec((hidden, in_dim), lambda i: (0, 0)),
                  pl.BlockSpec((hidden, 1), lambda i: (0, 0)),
                  pl.BlockSpec((hidden, 1), lambda i: (0, 0))],
        out_specs=(pl.BlockSpec((1, tile_n), lambda i: (0, i)),
                   pl.BlockSpec((1, 1), lambda i: (0, 0))),
        scratch_shapes=[pltpu.VMEM((1, 1), jnp.float32),
                        pltpu.VMEM((1, 1), jnp.float32),
                        pltpu.VMEM((1, 1), jnp.float32)],
        compiler_params=pltpu.CompilerParams(
            dimension_semantics=("arbitrary",)),
    )(n_arr, b2, role_p, u, w1r, b1_eff, w2_col)

    selected_role_index = sel_i32[0, :n].astype(jnp.bool_)
    return selected_role_index, logp[0, 0]


def init_params(key, in_dim, hidden_dim):
    """Synthetic init mimicking nn.Linear's uniform(-1/sqrt(fan_in), ...) in
    the PyTorch weight layout."""
    k1, k2, k3, k4 = jax.random.split(key, 4)
    bound1 = 1.0 / jnp.sqrt(2.0 * in_dim)
    bound2 = 1.0 / jnp.sqrt(1.0 * hidden_dim)
    return {
        "w1": jax.random.uniform(k1, (hidden_dim, 2 * in_dim), jnp.float32, -bound1, bound1),
        "b1": jax.random.uniform(k2, (hidden_dim,), jnp.float32, -bound1, bound1),
        "w2": jax.random.uniform(k3, (1, hidden_dim), jnp.float32, -bound2, bound2),
        "b2": jax.random.uniform(k4, (1,), jnp.float32, -bound2, bound2),
    }


if __name__ == "__main__":
    key = jax.random.PRNGKey(0)
    kq, kr, kp, ks = jax.random.split(key, 4)

    in_dim = 16
    hidden_dim = 32
    num_roles = 8

    query_embedding = jax.random.normal(kq, (in_dim,), jnp.float32)
    role_embedding = jax.random.normal(kr, (num_roles, in_dim), jnp.float32)
    params = init_params(kp, in_dim, hidden_dim)

    selected_role_index, log_probs = role_selector_forward(
        query_embedding, role_embedding, params, key=ks)
    jax.block_until_ready((selected_role_index, log_probs))

    assert selected_role_index.shape == (num_roles,)
    assert selected_role_index.dtype == jnp.bool_
    assert log_probs.shape == ()

    # Pure-JAX reference for the log-prob given the kernel's sampled mask
    # (matches the PyTorch module, CONST_EPS included).
    cat = jnp.concatenate(
        [role_embedding, jnp.broadcast_to(query_embedding, (num_roles, in_dim))], axis=-1)
    h_ref = jnp.maximum(cat @ params["w1"].T + params["b1"], 0.0)
    logits_ref = (h_ref @ params["w2"].T + params["b2"]).reshape(-1)
    scores_ref = jax.nn.sigmoid(logits_ref)
    if bool(jnp.any(selected_role_index)):
        lp_ref = jnp.sum(jnp.where(selected_role_index,
                                   jnp.log(scores_ref + CONST_EPS), 0.0))
    else:
        lp_ref = jnp.sum(jnp.log(1.0 - scores_ref + CONST_EPS))
    assert abs(float(log_probs) - float(lp_ref)) < 1e-3, (float(log_probs), float(lp_ref))

    print("KERNEL_OK")
</pallas_src>

<mosaic_0001>
module attributes {stable_mosaic.version = 11 : i64} {
  func.func @role_selector_kernel(%arg0: i32, %arg1: memref<1xi32, #tpu.memory_space<smem>>, %arg2: memref<1xf32, #tpu.memory_space<smem>>, %arg3: memref<128x16xf32, #tpu.memory_space<vmem>>, %arg4: memref<1x128xf32, #tpu.memory_space<vmem>>, %arg5: memref<32x16xf32, #tpu.memory_space<vmem>>, %arg6: memref<32x1xf32, #tpu.memory_space<vmem>>, %arg7: memref<32x1xf32, #tpu.memory_space<vmem>>, %arg8: memref<1x128xi32, #tpu.memory_space<vmem>>, %arg9: memref<1x1xf32, #tpu.memory_space<vmem>>, %arg10: memref<1x1xf32, #tpu.memory_space<vmem>>, %arg11: memref<1x1xf32, #tpu.memory_space<vmem>>, %arg12: memref<1x1xf32, #tpu.memory_space<vmem>>) attributes {dimension_semantics = [#tpu.dimension_semantics<arbitrary>], iteration_bounds = array<i64: 1>, scalar_prefetch = 0 : i64, scratch_operands = 3 : i64, tpu.core_type = #tpu.core_type<tc>, window_params = [{transform_indices = @transform_0, window_bounds = array<i64: 1>}, {transform_indices = @transform_1, window_bounds = array<i64: 1>}, {transform_indices = @transform_2, window_bounds = array<i64: 128, 16>}, {transform_indices = @transform_3, window_bounds = array<i64: 1, 128>}, {pipeline_mode = #tpu.pipeline_mode<synchronous>, transform_indices = @transform_4, window_bounds = array<i64: 32, 16>}, {pipeline_mode = #tpu.pipeline_mode<synchronous>, transform_indices = @transform_5, window_bounds = array<i64: 32, 1>}, {pipeline_mode = #tpu.pipeline_mode<synchronous>, transform_indices = @transform_6, window_bounds = array<i64: 32, 1>}, {transform_indices = @transform_7, window_bounds = array<i64: 1, 128>}, {pipeline_mode = #tpu.pipeline_mode<synchronous>, transform_indices = @transform_8, window_bounds = array<i64: 1, 1>}]} {
    %c0_i32 = arith.constant 0 : i32
    %0 = arith.cmpi eq, %arg0, %c0_i32 : i32
    %1 = arith.extui %0 : i1 to i32
    %c0_i32_0 = arith.constant 0 : i32
    %2 = arith.cmpi ne, %1, %c0_i32_0 : i32
    scf.if %2 {
      %cst_39 = arith.constant 0.000000e+00 : f32
      %68 = vector.broadcast %cst_39 : f32 to vector<1x1xf32>
      %c0_40 = arith.constant 0 : index
      %c0_41 = arith.constant 0 : index
      %69 = vector.load %arg10[%c0_40, %c0_41] : memref<1x1xf32, #tpu.memory_space<vmem>>, vector<1x1xf32>
      tpu.vector_store %arg10[%c0_40, %c0_41], %68 {strides = array<i32>} : memref<1x1xf32, #tpu.memory_space<vmem>>, vector<1x1xf32>,
      %cst_42 = arith.constant 0.000000e+00 : f32
      %70 = vector.broadcast %cst_42 : f32 to vector<1x1xf32>
      %c0_43 = arith.constant 0 : index
      %c0_44 = arith.constant 0 : index
      %71 = vector.load %arg11[%c0_43, %c0_44] : memref<1x1xf32, #tpu.memory_space<vmem>>, vector<1x1xf32>
      tpu.vector_store %arg11[%c0_43, %c0_44], %70 {strides = array<i32>} : memref<1x1xf32, #tpu.memory_space<vmem>>, vector<1x1xf32>,
      %cst_45 = arith.constant 0.000000e+00 : f32
      %72 = vector.broadcast %cst_45 : f32 to vector<1x1xf32>
      %c0_46 = arith.constant 0 : index
      %c0_47 = arith.constant 0 : index
      %73 = vector.load %arg12[%c0_46, %c0_47] : memref<1x1xf32, #tpu.memory_space<vmem>>, vector<1x1xf32>
      tpu.vector_store %arg12[%c0_46, %c0_47], %72 {strides = array<i32>} : memref<1x1xf32, #tpu.memory_space<vmem>>, vector<1x1xf32>,
    } else {
    }
    %c0 = arith.constant 0 : index
    %c0_1 = arith.constant 0 : index
    %3 = vector.load %arg5[%c0, %c0_1] : memref<32x16xf32, #tpu.memory_space<vmem>>, vector<32x16xf32>
    %c0_2 = arith.constant 0 : index
    %c0_3 = arith.constant 0 : index
    %4 = vector.load %arg3[%c0_2, %c0_3] : memref<128x16xf32, #tpu.memory_space<vmem>>, vector<128x16xf32>
    %cst = arith.constant dense<0.000000e+00> : vector<32x128xf32>
    %5 = tpu.matmul %3, %4, %cst {dimension_numbers = #tpu.dot_dimension_numbers<[1], [1], [0], [0], [0, 0, 1, 0], [], []>} : vector<32x16xf32>, vector<128x16xf32>, vector<32x128xf32> -> vector<32x128xf32>
    %c0_4 = arith.constant 0 : index
    %c0_5 = arith.constant 0 : index
    %6 = vector.load %arg6[%c0_4, %c0_5] : memref<32x1xf32, #tpu.memory_space<vmem>>, vector<32x1xf32>
    %7 = vector.broadcast %6 : vector<32x1xf32> to vector<32x128xf32>
    %8 = arith.addf %5, %7 : vector<32x128xf32>
    %cst_6 = arith.constant 0.000000e+00 : f32
    %9 = vector.broadcast %cst_6 : f32 to vector<32x128xf32>
    %10 = arith.maximumf %8, %9 : vector<32x128xf32>
    %c0_7 = arith.constant 0 : index
    %c0_8 = arith.constant 0 : index
    %11 = vector.load %arg7[%c0_7, %c0_8] : memref<32x1xf32, #tpu.memory_space<vmem>>, vector<32x1xf32>
    %12 = vector.broadcast %11 : vector<32x1xf32> to vector<32x128xf32>
    %13 = arith.mulf %10, %12 : vector<32x128xf32>
    %cst_9 = arith.constant dense<0.000000e+00> : vector<128xf32>
    %14 = vector.multi_reduction <add>, %13, %cst_9 [0] : vector<32x128xf32> to vector<128xf32>
    %15 = vector.shape_cast %14 : vector<128xf32> to vector<1x128xf32>
    %c0_10 = arith.constant 0 : index
    %16 = memref.load %arg2[%c0_10] : memref<1xf32, #tpu.memory_space<smem>>
    %17 = vector.broadcast %16 : f32 to vector<1x128xf32>
    %18 = arith.addf %15, %17 : vector<1x128xf32>
    %c128_i32 = arith.constant 128 : i32
    %19 = arith.muli %arg0, %c128_i32 : i32
    %20 = tpu.iota {dimensions = array<i32: 1>} : vector<1x128xi32>
    %21 = vector.broadcast %19 : i32 to vector<1x128xi32>
    %22 = arith.addi %21, %20 : vector<1x128xi32>
    %c0_11 = arith.constant 0 : index
    %23 = memref.load %arg1[%c0_11] : memref<1xi32, #tpu.memory_space<smem>>
    %24 = vector.broadcast %23 : i32 to vector<1x128xi32>
    %25 = arith.cmpi slt, %22, %24 : vector<1x128xi32>
    %26 = arith.negf %18 : vector<1x128xf32>
    %27 = math.exp %26 : vector<1x128xf32>
    %cst_12 = arith.constant 1.000000e+00 : f32
    %28 = vector.broadcast %cst_12 : f32 to vector<1x128xf32>
    %29 = arith.addf %28, %27 : vector<1x128xf32>
    %30 = arith.divf %28, %29 : vector<1x128xf32>
    %c0_13 = arith.constant 0 : index
    %c0_14 = arith.constant 0 : index
    %31 = vector.load %arg4[%c0_13, %c0_14] : memref<1x128xf32, #tpu.memory_space<vmem>>, vector<1x128xf32>
    %32 = arith.cmpf olt, %31, %30 : vector<1x128xf32>
    %33 = arith.andi %32, %25 : vector<1x128xi1>
    %cst_15 = arith.constant 9.99999974E-6 : f32
    %34 = vector.broadcast %cst_15 : f32 to vector<1x128xf32>
    %35 = arith.addf %30, %34 : vector<1x128xf32>
    %36 = math.log %35 : vector<1x128xf32>
    %cst_16 = arith.constant 1.000000e+00 : f32
    %37 = vector.broadcast %cst_16 : f32 to vector<1x128xf32>
    %38 = arith.subf %37, %30 : vector<1x128xf32>
    %cst_17 = arith.constant 9.99999974E-6 : f32
    %39 = vector.broadcast %cst_17 : f32 to vector<1x128xf32>
    %40 = arith.addf %38, %39 : vector<1x128xf32>
    %41 = math.log %40 : vector<1x128xf32>
    %c0_18 = arith.constant 0 : index
    %c0_19 = arith.constant 0 : index
    %42 = vector.load %arg10[%c0_18, %c0_19] : memref<1x1xf32, #tpu.memory_space<vmem>>, vector<1x1xf32>
    %cst_20 = arith.constant 0.000000e+00 : f32
    %43 = vector.broadcast %cst_20 : f32 to vector<1x128xf32>
    %44 = arith.select %33, %36, %43 : vector<1x128xi1>, vector<1x128xf32>
    %cst_21 = arith.constant dense<0.000000e+00> : vector<1xf32>
    %45 = vector.multi_reduction <add>, %44, %cst_21 [1] : vector<1x128xf32> to vector<1xf32>
    %46 = vector.shape_cast %45 : vector<1xf32> to vector<1x1xf32>
    %47 = arith.addf %42, %46 : vector<1x1xf32>
    %c0_22 = arith.constant 0 : index
    %c0_23 = arith.constant 0 : index
    %48 = vector.load %arg10[%c0_22, %c0_23] : memref<1x1xf32, #tpu.memory_space<vmem>>, vector<1x1xf32>
    tpu.vector_store %arg10[%c0_22, %c0_23], %47 {strides = array<i32>} : memref<1x1xf32, #tpu.memory_space<vmem>>, vector<1x1xf32>,
    %c0_24 = arith.constant 0 : index
    %c0_25 = arith.constant 0 : index
    %49 = vector.load %arg11[%c0_24, %c0_25] : memref<1x1xf32, #tpu.memory_space<vmem>>, vector<1x1xf32>
    %cst_26 = arith.constant 0.000000e+00 : f32
    %50 = vector.broadcast %cst_26 : f32 to vector<1x128xf32>
    %51 = arith.select %25, %41, %50 : vector<1x128xi1>, vector<1x128xf32>
    %cst_27 = arith.constant dense<0.000000e+00> : vector<1xf32>
    %52 = vector.multi_reduction <add>, %51, %cst_27 [1] : vector<1x128xf32> to vector<1xf32>
    %53 = vector.shape_cast %52 : vector<1xf32> to vector<1x1xf32>
    %54 = arith.addf %49, %53 : vector<1x1xf32>
    %c0_28 = arith.constant 0 : index
    %c0_29 = arith.constant 0 : index
    %55 = vector.load %arg11[%c0_28, %c0_29] : memref<1x1xf32, #tpu.memory_space<vmem>>, vector<1x1xf32>
    tpu.vector_store %arg11[%c0_28, %c0_29], %54 {strides = array<i32>} : memref<1x1xf32, #tpu.memory_space<vmem>>, vector<1x1xf32>,
    %c0_30 = arith.constant 0 : index
    %c0_31 = arith.constant 0 : index
    %56 = vector.load %arg12[%c0_30, %c0_31] : memref<1x1xf32, #tpu.memory_space<vmem>>, vector<1x1xf32>
    %57 = arith.extui %33 : vector<1x128xi1> to vector<1x128xi32>
    %58 = arith.sitofp %57 : vector<1x128xi32> to vector<1x128xf32>
    %cst_32 = arith.constant dense<0.000000e+00> : vector<1xf32>
    %59 = vector.multi_reduction <add>, %58, %cst_32 [1] : vector<1x128xf32> to vector<1xf32>
    %60 = vector.shape_cast %59 : vector<1xf32> to vector<1x1xf32>
    %61 = arith.addf %56, %60 : vector<1x1xf32>
    %c0_33 = arith.constant 0 : index
    %c0_34 = arith.constant 0 : index
    %62 = vector.load %arg12[%c0_33, %c0_34] : memref<1x1xf32, #tpu.memory_space<vmem>>, vector<1x1xf32>
    tpu.vector_store %arg12[%c0_33, %c0_34], %61 {strides = array<i32>} : memref<1x1xf32, #tpu.memory_space<vmem>>, vector<1x1xf32>,
    %63 = arith.extui %33 : vector<1x128xi1> to vector<1x128xi32>
    %c0_35 = arith.constant 0 : index
    %c0_36 = arith.constant 0 : index
    %64 = vector.load %arg8[%c0_35, %c0_36] : memref<1x128xi32, #tpu.memory_space<vmem>>, vector<1x128xi32>
    tpu.vector_store %arg8[%c0_35, %c0_36], %63 {strides = array<i32>} : memref<1x128xi32, #tpu.memory_space<vmem>>, vector<1x128xi32>,
    %c0_i32_37 = arith.constant 0 : i32
    %65 = arith.cmpi eq, %arg0, %c0_i32_37 : i32
    %66 = arith.extui %65 : i1 to i32
    %c0_i32_38 = arith.constant 0 : i32
    %67 = arith.cmpi ne, %66, %c0_i32_38 : i32
    scf.if %67 {
      %c0_39 = arith.constant 0 : index
      %c0_40 = arith.constant 0 : index
      %68 = vector.load %arg12[%c0_39, %c0_40] : memref<1x1xf32, #tpu.memory_space<vmem>>, vector<1x1xf32>
      %cst_41 = arith.constant 0.000000e+00 : f32
      %69 = vector.broadcast %cst_41 : f32 to vector<1x1xf32>
      %70 = arith.cmpf ogt, %68, %69 : vector<1x1xf32>
      %c0_42 = arith.constant 0 : index
      %c0_43 = arith.constant 0 : index
      %71 = vector.load %arg10[%c0_42, %c0_43] : memref<1x1xf32, #tpu.memory_space<vmem>>, vector<1x1xf32>
      %c0_44 = arith.constant 0 : index
      %c0_45 = arith.constant 0 : index
      %72 = vector.load %arg11[%c0_44, %c0_45] : memref<1x1xf32, #tpu.memory_space<vmem>>, vector<1x1xf32>
      %73 = arith.select %70, %71, %72 : vector<1x1xi1>, vector<1x1xf32>
      %c0_46 = arith.constant 0 : index
      %c0_47 = arith.constant 0 : index
      %74 = vector.load %arg9[%c0_46, %c0_47] : memref<1x1xf32, #tpu.memory_space<vmem>>, vector<1x1xf32>
      tpu.vector_store %arg9[%c0_46, %c0_47], %73 {strides = array<i32>} : memref<1x1xf32, #tpu.memory_space<vmem>>, vector<1x1xf32>,
    } else {
    }
    return
  }
  func.func @transform_0(%arg0: i32) -> i32 {
    %c0_i32 = arith.constant 0 : i32
    %c0_i32_0 = arith.constant 0 : i32
    return %c0_i32 : i32
  }
  func.func @transform_1(%arg0: i32) -> i32 {
    %c0_i32 = arith.constant 0 : i32
    %c0_i32_0 = arith.constant 0 : i32
    return %c0_i32 : i32
  }
  func.func @transform_2(%arg0: i32) -> (i32, i32) {
    %c0_i32 = arith.constant 0 : i32
    %c0_i32_0 = arith.constant 0 : i32
    return %arg0, %c0_i32 : i32, i32
  }
  func.func @transform_3(%arg0: i32) -> (i32, i32) {
    %c0_i32 = arith.constant 0 : i32
    %c0_i32_0 = arith.constant 0 : i32
    return %c0_i32, %arg0 : i32, i32
  }
  func.func @transform_4(%arg0: i32) -> (i32, i32) {
    %c0_i32 = arith.constant 0 : i32
    %c0_i32_0 = arith.constant 0 : i32
    %c0_i32_1 = arith.constant 0 : i32
    return %c0_i32, %c0_i32_0 : i32, i32
  }
  func.func @transform_5(%arg0: i32) -> (i32, i32) {
    %c0_i32 = arith.constant 0 : i32
    %c0_i32_0 = arith.constant 0 : i32
    %c0_i32_1 = arith.constant 0 : i32
    return %c0_i32, %c0_i32_0 : i32, i32
  }
  func.func @transform_6(%arg0: i32) -> (i32, i32) {
    %c0_i32 = arith.constant 0 : i32
    %c0_i32_0 = arith.constant 0 : i32
    %c0_i32_1 = arith.constant 0 : i32
    return %c0_i32, %c0_i32_0 : i32, i32
  }
  func.func @transform_7(%arg0: i32) -> (i32, i32) {
    %c0_i32 = arith.constant 0 : i32
    %c0_i32_0 = arith.constant 0 : i32
    return %c0_i32, %arg0 : i32, i32
  }
  func.func @transform_8(%arg0: i32) -> (i32, i32) {
    %c0_i32 = arith.constant 0 : i32
    %c0_i32_0 = arith.constant 0 : i32
    %c0_i32_1 = arith.constant 0 : i32
    return %c0_i32, %c0_i32_0 : i32, i32
  }
}

</mosaic_0001>

<bundles_post_ra>
// kernel: tpu_custom_call.1
= control target key start
LH: loop header
LB: loop body
LE: loop exit
PB: predicated region body
PF: predicated region fallthrough
CT: control target
= control target key end

     0   :  { %16 = vsyncpa [#allocation8], 0  ;;  %vm84_vm0 = vcmask 130048   ;;  %v565_v6 = vmov 0   ;;  %s835_s0 = inlined_call_operand.<no memory space> [shape: s32[1], index: 0, kind: input, shape index: {}]   ;;  %s836_s1 = inlined_call_operand.<no memory space> [shape: f32[1], index: 1, kind: input, shape index: {}]   ;;  %s837_s2 = inlined_call_operand.vmem [shape: f32[128,16], index: 2, kind: input, shape index: {}]   ;;  %s838_s3 = inlined_call_operand.vmem [shape: f32[1,128], index: 3, kind: input, shape index: {}]   ;;  %s839_s4 = inlined_call_operand.vmem [shape: f32[32,16], index: 4, kind: input, shape index: {}]   ;;  %s840_s5 = inlined_call_operand.vmem [shape: f32[32,1], index: 5, kind: input, shape index: {}]   ;;  %s841_s6 = inlined_call_operand.vmem [shape: f32[32,1], index: 6, kind: input, shape index: {}]   ;;  %s842_s7 = inlined_call_operand.hbm [shape: s32[1,128], index: 7, kind: output, shape index: {0}]   ;;  %s843_s8 = inlined_call_operand.hbm [shape: f32[1,1], index: 8, kind: output, shape index: {1}]  }
   0x1   :  { %v44_v0 = vld [vmem:[%s837_s2] sm:$0xff]  ;;  %v45_v1 = vld [vmem:[%s837_s2 + $0x8] sm:$0xff]  ;;  %v46_v2 = vld [vmem:[%s837_s2 + $0x10] sm:$0xff]  ;;  %507 = vset.pattern.permute.xlu0 %v565_v6  ;;  %508 = vset.pattern.permute.xlu1 %v565_v6 }
   0x2   :  { %v439_v3 = vpack.c.bf16 %v45_v1, %v44_v0  ;;  %vm625_vm1 = vmpackc.low %vm84_vm0, %vm84_vm0  ;;  %v47_v5 = vld [vmem:[%s837_s2 + $0x18] sm:$0xff]  ;;  %v40_v8 = vld [vmem:[%s839_s4] sm:$0xff] }
   0x3   :  { %v445_v7 = vpack.c.bf16 %v47_v5, %v46_v2  ;;  %v48_v9 = vld [vmem:[%s837_s2 + $0x20] sm:$0xff]  ;;  %v49_v10 = vld [vmem:[%s837_s2 + $0x28] sm:$0xff]  ;;  %433 = vmatprep.mubr.msk.f32.mxu0 %vm84_vm0, %v40_v8  ;;  %v42_v11 = vld [vmem:[%s839_s4 + $0x10] sm:$0xff] }
   0x4   :  { %441 = vmatprep.subr.msk.bf16.mxu0 %vm625_vm1, %v439_v3  ;;  %487 = vmatprep.subr.msk.bf16.mxu1 %vm625_vm1, %v439_v3  ;;  %v60_v12 = vld [vmem:[%s840_s5] sm:$0xff]  ;;  %v62_v13 = vld [vmem:[%s840_s5 + $0x10] sm:$0xff]  ;;  %v451_v14 = vpack.c.bf16 %v49_v10, %v48_v9 }
   0x5   :  { %444 = vmatpush3.bf16.xpose.msk.msra.mxu0 %vm625_vm1, %v439_v3  ;;  %495 = vmatpush3.bf16.xpose.msk.msra.mxu1 %vm625_vm1, %v439_v3 }
   0x6   :  { %447 = vmatprep.subr.msk.bf16.mxu0 %vm625_vm1, %v445_v7  ;;  %488 = vmatprep.subr.msk.bf16.mxu1 %vm625_vm1, %v445_v7 }
   0x7   :  { %436 = vmatprep.mubr.msk.f32.mxu1 %vm84_vm0, %v42_v11  ;;  %66 = vperm.xlu0 %507, %v60_v12  }
   0x8   :  { %76 = vperm.xlu1 %508, %v62_v13  }
   0x9   :  { %17 = vsyncpa [#allocation10], 0  ;;  %v61_v15 = vld [vmem:[%s840_s5 + $0x8] sm:$0xff]  ;;  %v63_v16 = vld [vmem:[%s840_s5 + $0x18] sm:$0xff]  ;;  %v275_v13 = vlaneseq  ;;  %vm300_vm4 = vcmask 1040384   ;;  %vm36_vm6 = vcmask 0  }
   0xa   :  { %v50_v17 = vld [vmem:[%s837_s2 + $0x30] sm:$0xff]  ;;  %v51_v18 = vld [vmem:[%s837_s2 + $0x38] sm:$0xff]  ;;  %v234_v19 = vld [vmem:[%s841_s6] sm:$0xff] }
   0xb   :  { %71 = vperm.xlu0 %507, %v61_v15   ;;  %v235_v20 = vld [vmem:[%s841_s6 + $0x8] sm:$0xff]  ;;  %v457_v21 = vpack.c.bf16 %v51_v18, %v50_v17  ;;  %v236_v22 = vld [vmem:[%s841_s6 + $0x10] sm:$0xff]  ;;  %v237_v23 = vld [vmem:[%s841_s6 + $0x18] sm:$0xff]  ;;  %v280_v15 = vstv %s835_s0  ;;  %s567_s0 = smov [#allocation7]  }
   0xc   :  { %81 = vperm.xlu1 %508, %v63_v16   ;;  %v52_v24 = vld [vmem:[%s837_s2 + $0x40] sm:$0xff]  ;;  %v53_v25 = vld [vmem:[%s837_s2 + $0x48] sm:$0xff]  ;;  %v54_v27 = vld [vmem:[%s837_s2 + $0x50] sm:$0xff] }
   0xd   :  { %450 = vmatpush3.bf16.xpose.msk.msra.mxu0 %vm625_vm1, %v445_v7  ;;  %496 = vmatpush3.bf16.xpose.msk.msra.mxu1 %vm625_vm1, %v445_v7  ;;  %v463_v26 = vpack.c.bf16 %v53_v25, %v52_v24  ;;  %v55_v28 = vld [vmem:[%s837_s2 + $0x58] sm:$0xff]  ;;  %v56_v30 = vld [vmem:[%s837_s2 + $0x60] sm:$0xff]  ;;  %v57_v31 = vld [vmem:[%s837_s2 + $0x68] sm:$0xff]  ;;  %v272_v7 = vstv %s836_s1  ;;  %s337_s1 = sshll.u32 %s567_s0, 4  ;;  %s338_s1 = int_to_ptr.vmem [resolvable:$true] %s337_s1 }
   0xe   :  { %453 = vmatprep.subr.msk.bf16.mxu0 %vm625_vm1, %v451_v14  ;;  %489 = vmatprep.subr.msk.bf16.mxu1 %vm625_vm1, %v451_v14  ;;  %v469_v29 = vpack.c.bf16 %v55_v28, %v54_v27  ;;  %v475_v32 = vpack.c.bf16 %v57_v31, %v56_v30  ;;  %v58_v33 = vld [vmem:[%s837_s2 + $0x70] sm:$0xff]  ;;  %v59_v34 = vld [vmem:[%s837_s2 + $0x78] sm:$0xff]  ;;  %v41_v36 = vld [vmem:[%s839_s4 + $0x8] sm:$0xff]  ;;  %s521_s18 = scalar_lea.vmem %s338_s1, 32  ;;  %p522_p1 = scmp.lt.s32.totalorder %s338_s1, %s338_s1 }
   0xf   :  { %240 = vperm.xlu0 %507, %v234_v19   ;;  %v481_v35 = vpack.c.bf16 %v59_v34, %v58_v33  ;;  %v43_v37 = vld [vmem:[%s839_s4 + $0x18] sm:$0xff]  ;;  %v288_v16 = vld [vmem:[%s838_s3] sm:$0x1]  ;;  %s517_s3 = scalar_lea.vmem %s338_s1, 16 }
  0x10   :  { %245 = vperm.xlu1 %508, %v235_v20   ;;  %p518_p0 = scmp.ne.s32.totalorder %s338_s1, %s517_s3  ;;  %p523_p2 = scmp.lt.s32.totalorder %s521_s18, %s517_s3 }
  0x12   :  { %p524_p3 = por %p523_p2, %p522_p1 }
  0x13   :  { %250 = vperm.xlu0 %507, %v236_v22   ;;  %v566_v22 = vmov 0.0  }
  0x14   :  { %255 = vperm.xlu1 %508, %v237_v23   ;;  %39 = vst.msk [vmem:[#allocation4] sm:$0x1] %vm36_vm6, %v566_v22  ;;  %37 = vst.msk [vmem:[#allocation2] sm:$0x1] %vm36_vm6, %v566_v22  ;;  %p525_p4 = pnand %p524_p3, %p518_p0 }
  0x15   :  { %456 = vmatpush3.bf16.xpose.msk.msra.mxu0 %vm625_vm1, %v451_v14  ;;  %497 = vmatpush3.bf16.xpose.msk.msra.mxu1 %vm625_vm1, %v451_v14  ;;  %v276_v14 = vand.u32 127, %v275_v13  ;;  %38 = vst.msk [vmem:[#allocation3] sm:$0x1] %vm36_vm6, %v566_v22 }
  0x16   :  { %459 = vmatprep.subr.msk.bf16.mxu0 %vm625_vm1, %v457_v21  ;;  %490 = vmatprep.subr.msk.bf16.mxu1 %vm625_vm1, %v457_v21 }
  0x17   :  { %vm783_vm2 = vcmp.lt.s32.totalorder %v276_v14, %v280_v15 }
  0x1d   :  { %462 = vmatpush3.bf16.xpose.msk.msra.mxu0 %vm625_vm1, %v457_v21  ;;  %498 = vmatpush3.bf16.xpose.msk.msra.mxu1 %vm625_vm1, %v457_v21 }
  0x1e   :  { %465 = vmatprep.subr.msk.bf16.mxu0 %vm625_vm1, %v463_v26  ;;  %491 = vmatprep.subr.msk.bf16.mxu1 %vm625_vm1, %v463_v26 }
  0x25   :  { %468 = vmatpush3.bf16.xpose.msk.msra.mxu0 %vm625_vm1, %v463_v26  ;;  %499 = vmatpush3.bf16.xpose.msk.msra.mxu1 %vm625_vm1, %v463_v26 }
  0x26   :  { %471 = vmatprep.subr.msk.bf16.mxu0 %vm625_vm1, %v469_v29  ;;  %492 = vmatprep.subr.msk.bf16.mxu1 %vm625_vm1, %v469_v29 }
  0x2d   :  { %474 = vmatpush3.bf16.xpose.msk.msra.mxu0 %vm625_vm1, %v469_v29  ;;  %500 = vmatpush3.bf16.xpose.msk.msra.mxu1 %vm625_vm1, %v469_v29 }
  0x2e   :  { %477 = vmatprep.subr.msk.bf16.mxu0 %vm625_vm1, %v475_v32  ;;  %493 = vmatprep.subr.msk.bf16.mxu1 %vm625_vm1, %v475_v32 }
  0x35   :  { %480 = vmatpush3.bf16.xpose.msk.msra.mxu0 %vm625_vm1, %v475_v32  ;;  %501 = vmatpush3.bf16.xpose.msk.msra.mxu1 %vm625_vm1, %v475_v32 }
  0x36   :  { %483 = vmatprep.subr.msk.bf16.mxu0 %vm625_vm1, %v481_v35  ;;  %494 = vmatprep.subr.msk.bf16.mxu1 %vm625_vm1, %v481_v35 }
  0x3d   :  { %486 = vmatpush3.bf16.xpose.msk.msra.mxu0 %vm625_vm1, %v481_v35  ;;  %502 = vmatpush3.bf16.xpose.msk.msra.mxu1 %vm625_vm1, %v481_v35 }
  0x44   :  { %434 = vmatmul.mubr.msk.f32.vlgmr.msra.gmra.mrb[0].mxu0 %vm84_vm0, %v41_v36  ;;  %437 = vmatmul.mubr.msk.f32.vlgmr.msra.gmra.mrb[0].mxu1 %vm84_vm0, %v43_v37 }
  0x86   :  { %v67_v38 = vpop.permute.xlu0 %66 }
  0x87   :  { %v77_v39 = vpop.permute.xlu1 %76 }
  0x8a   :  { %v72_v40 = vpop.permute.xlu0 %71 }
  0x8b   :  { %v82_v41 = vpop.permute.xlu1 %81 }
  0x8e   :  { %v241_v42 = vpop.permute.xlu0 %240 }
  0x8f   :  { %v246_v51 = vpop.permute.xlu1 %245 }
  0x92   :  { %v251_v58 = vpop.permute.xlu0 %250 }
  0x93   :  { %v256_v61 = vpop.permute.xlu1 %255 }
 0x117   :  { %v435_v43 = vpop.f32.mrb[0].mxu0  ;;  %v438_v44 = vpop.f32.mrb[0].mxu1 }
 0x118   :  { %v217_v45 = vadd.f32 %v435_v43, %v72_v40  ;;  %v211_v46 = vpop.f32.mrb[1].mxu0  ;;  %v221_v47 = vpop.f32.mrb[1].mxu1  ;;  %v227_v48 = vadd.f32 %v438_v44, %v82_v41 }
 0x119   :  { %v212_v49 = vadd.f32 %v211_v46, %v67_v38  ;;  %v222_v50 = vadd.f32 %v221_v47, %v77_v39 }
 0x11a   :  { %v231_v52 = vmax.f32 %v217_v45, 0.0  ;;  %v233_v56 = vmax.f32 %v227_v48, 0.0 }
 0x11b   :  { %v230_v53 = vmax.f32 %v212_v49, 0.0  ;;  %v232_v54 = vmax.f32 %v222_v50, 0.0 }
 0x11c   :  { %v259_v55 = vmul.f32 %v246_v51, %v231_v52  ;;  %v261_v62 = vmul.f32 %v256_v61, %v233_v56 }
 0x11d   :  { %v258_v57 = vmul.f32 %v241_v42, %v230_v53  ;;  %v260_v60 = vmul.f32 %v251_v58, %v232_v54 }
 0x11f   :  { %v262_v59 = vadd.f32 %v259_v55, %v258_v57 }
 0x121   :  { %v263_v63 = vadd.f32 %v262_v59, %v260_v60 }
 0x123   :  { %v264_v0 = vadd.f32 %v263_v63, %v261_v62 }
 0x125   :  { %v265_v1 = vrot.slane %v264_v0, 4 }
 0x127   :  { %v266_v2 = vadd.f32 %v265_v1, %v264_v0 }
 0x129   :  { %v267_v3 = vrot.slane %v266_v2, 2 }
 0x12b   :  { %v268_v4 = vadd.f32 %v267_v3, %v266_v2 }
 0x12d   :  { %v269_v5 = vrot.slane %v268_v4, 1 }
 0x12f   :  { %v270_v8 = vadd.f32 %v269_v5, %v268_v4 }
 0x131   :  { %v273_v9 = vadd.f32 %v272_v7, %v270_v8 }
 0x133   :  { %v379_v10 = vmul.f32 -1.442695, %v273_v9 }
 0x135   :  { %509 = vpow2.f32 %v379_v10 }
 0x13f   :  { %v510_v11 = vpop.eup %509 }
 0x140   :  { %v285_v12 = vadd.f32 1.0, %v510_v11 }
 0x142   :  { %511 = vrcp.f32 %v285_v12 }
 0x14c   :  { %v512_v18 = vpop.eup %511 }
 0x14d   :  { %vm289_vm3 = vcmp.lt.f32.partialorder %v288_v16, %v512_v18  ;;  %v291_v19 = vadd.f32 1e-05, %v512_v18  ;;  %v294_v20 = vsub.f32 1.0, %v512_v18 }
 0x14e   :  { %vm789_vm5 = vmand %vm289_vm3, %vm783_vm2 }
 0x14f   :  { %v380_v23 = vsel %vm789_vm5, 1.0, %v566_v22  ;;  %513 = vlog2.f32 %v291_v19  ;;  %v295_v24 = vadd.f32 1e-05, %v294_v20  ;;  %v314_v25 = vsel %vm789_vm5, 1, %v565_v6 }
 0x150   :  { %v316_v26 = vsel %vm300_vm4, %v380_v23, 0.0  ;;  %321 = vst [vmem:[#allocation7] sm:$0x1] %v314_v25 }
 0x151   :  { %317 = vadd.xlane.f32.xlu0 %v316_v26  ;;  %515 = vlog2.f32 %v295_v24 }
 0x159   :  { %v514_v27 = vpop.eup %513 }
 0x15a   :  { %v293_v28 = vmul.f32 0.6931472, %v514_v27 }
 0x15b   :  { %v516_v29 = vpop.eup %515 }
 0x15c   :  { %v299_v30 = vsel %vm789_vm5, %v293_v28, 0.0  ;;  %v297_v31 = vmul.f32 0.6931472, %v516_v29 }
 0x15d   :  { %v301_v6 = vsel %vm300_vm4, %v299_v30, 0.0 }
 0x15e   :  { %302 = vadd.xlane.f32.xlu1 %v301_v6  ;;  %v308_v32 = vsel %vm783_vm2, %v297_v31, 0.0 }
 0x15f   :  { %309 = vadd.xlane.f32.xlu0 %v308_v32 }
 0x160   :  { %528 = shalt.err (!%p525_p4)
}
 0x161   :  { %s529_s21 = scalar_lea.hbm %s842_s7, 16 }
 0x162   :  { %p530_p5 = scmp.ne.s32.totalorder %s842_s7, %s529_s21  ;;  %p533_p6 = scmp.lt.u32.totalorder %s529_s21, %s842_s7 }
 0x164   :  { %p535_p7 = pnand %p533_p6, %p530_p5 }
 0x166   :  { %538 = shalt.err (!%p535_p7)
}
 0x167   :  { %340 = dma.vmem_to_hbm [thread:$0]  %s338_s1, 16, %s842_s7, [#allocation8]   ;;  %v313_v33 = vld [vmem:[#allocation4] sm:$0x1]  ;;  %v298_v36 = vld [vmem:[#allocation2] sm:$0x1] }
 0x168   :  { %v307_v37 = vld [vmem:[#allocation3] sm:$0x1]  ;;  %s568_s27 = smov [#allocation9]  }
 0x169   :  { %s347_s28 = sshll.u32 %s568_s27, 4  ;;  %s348_s28 = int_to_ptr.vmem [resolvable:$true] %s347_s28 }
 0x16a   :  { %s539_s7 = scalar_lea.vmem %s348_s28, 16  ;;  %s543_s29 = scalar_lea.vmem %s348_s28, 32 }
 0x16b   :  { %p540_p8 = scmp.ne.s32.totalorder %s348_s28, %s539_s7  ;;  %p544_p9 = scmp.lt.s32.totalorder %s348_s28, %s348_s28 }
 0x16c   :  { %p545_p10 = scmp.lt.s32.totalorder %s543_s29, %s539_s7 }
 0x16e   :  { %p546_p11 = por %p545_p10, %p544_p9 }
 0x170   :  { %p547_p12 = pnand %p546_p11, %p540_p8 }
 0x1de   :  { %v318_v34 = vpop.xlane.xlu0 %317 }
 0x1df   :  { %v319_v35 = vadd.f32 %v318_v34, %v313_v33 }
 0x1e1   :  { %320 = vst.msk [vmem:[#allocation4] sm:$0x1] %vm36_vm6, %v319_v35 }
 0x1e8   :  { %v325_v42 = vld [vmem:[#allocation4] sm:$0x1] }
 0x1e9   :  { %vm326_vm7 = vcmp.gt.f32.partialorder %v325_v42, 0.0 }
 0x1eb   :  { %v303_v38 = vpop.xlane.xlu1 %302 }
 0x1ec   :  { %v304_v39 = vadd.f32 %v303_v38, %v298_v36  ;;  %v310_v40 = vpop.xlane.xlu0 %309 }
 0x1ed   :  { %v311_v41 = vadd.f32 %v310_v40, %v307_v37 }
 0x1ee   :  { %306 = vst.msk [vmem:[#allocation2] sm:$0x1] %vm36_vm6, %v304_v39 }
 0x1ef   :  { %312 = vst.msk [vmem:[#allocation3] sm:$0x1] %vm36_vm6, %v311_v41 }
 0x1f5   :  { %v327_v43 = vld [vmem:[#allocation2] sm:$0x1] }
 0x1f6   :  { %v328_v44 = vld [vmem:[#allocation3] sm:$0x1] }
 0x1f7   :  { %v329_v45 = vsel %vm326_vm7, %v327_v43, %v328_v44 }
 0x1f8   :  { %330 = vst.msk [vmem:[#allocation9] sm:$0x1] %vm36_vm6, %v329_v45 }
 0x1f9   :  { %550 = shalt.err (!%p547_p12)
}
 0x1fa   :  { %s551_s10 = scalar_lea.hbm %s843_s8, 16 }
 0x1fb   :  { %p552_p13 = scmp.ne.s32.totalorder %s843_s8, %s551_s10  ;;  %p555_p0 = scmp.lt.u32.totalorder %s551_s10, %s843_s8 }
 0x1fd   :  { %p557_p1 = pnand %p555_p0, %p552_p13 }
 0x1ff   :  { %560 = shalt.err (!%p557_p1)
}
 0x200   :  { %350 = dma.vmem_to_hbm [thread:$0]  %s348_s28, 16, %s843_s8, [#allocation10]  }
 0x201   :  { %561 = dma.done.wait [#allocation8], 16  }
 0x202   :  { %562 = vsyncadd [#allocation8], 4294967280 }
 0x203   :  { %563 = dma.done.wait [#allocation10], 16  }
 0x204   :  { %564 = vsyncadd [#allocation10], 4294967280 }
 0x205   :  { %357 = vsyncpa [#allocation8], 1 }
 0x206   :  { %358 = vsyncpa [#allocation10], 1 }

</bundles_post_ra>
